<compile_context>
chip_gen: v5e
topology: v5e:2x2
jax: 0.10.0
libtpu: 0.0.40
codegen_flags: <defaults>
</compile_context>

<pallas_src>
from functools import partial

import jax
import jax.numpy as jnp
import numpy as np
from jax import lax
from jax.experimental import pallas as pl
from jax.experimental.pallas import tpu as pltpu


def lstm_head_kernel(tok_ref, emb_ref, wih_ref, whh_ref, b_ref, wout_ref,
                     bout_ref, out_ref, xs_ref, *, B, T, BP):
    """Fused embedding gather + LSTM recurrence + output Linear, all in VMEM.

    tok_ref : SMEM (B*T,) int32   token ids, row-major from (B, T)
    emb_ref : (V, H)              embedding table
    wih_ref : (H, 4H)             W_ih^T, 0.5 folded into i/f/o columns
    whh_ref : (H, 4H)             W_hh^T, 0.5 folded into i/f/o columns
    b_ref   : (1, 4H)             (b_ih + b_hh), 0.5 folded into i/f/o columns
    wout_ref: (H, OP)             W_out^T padded to OP=128 output lanes
    bout_ref: (1, OP)             b_out padded
    out_ref : (BP, OP)            padded output tile (rows/cols sliced in wrapper)
    xs_ref  : VMEM (T*BP, H)      scratch for gathered, time-major, batch-padded x
    """
    V, H = emb_ref.shape
    H4 = wih_ref.shape[1]

    # ---- Embedding gather: per-(t, b) dynamic row loads from VMEM table. ----
    # Padded batch rows (b >= B) stay zero.  NOTE: PyTorch nn.Embedding raises
    # on out-of-range ids; here they are clamped to the valid range instead.
    xs_ref[...] = jnp.zeros(xs_ref.shape, xs_ref.dtype)
    for t in range(T):
        for b in range(B):
            tok = tok_ref[b * T + t]
            tok = jnp.minimum(jnp.maximum(tok, 0), V - 1)
            xs_ref[pl.ds(t * BP + b, 1), :] = emb_ref[pl.ds(tok, 1), :]

    x_emb = xs_ref[...]                                               # (T*BP, H)

    # ---- Hoisted input projection: one matmul covers all timesteps. ----
    gates_x = (jnp.dot(x_emb, wih_ref[...],
                       preferred_element_type=jnp.float32)
               + b_ref[...])                                          # (T*BP, 4H)

    # ---- Post-tanh per-lane constants (pre-scale is folded into weights):
    #      sigmoid(z) = 0.5*tanh(0.5*z) + 0.5 on i/f/o lanes; tanh(z) on g.
    col = lax.broadcasted_iota(jnp.int32, (1, H4), 1)
    is_g = jnp.logical_and(col >= 2 * H, col < 3 * H)
    post_mul = jnp.where(is_g, 1.0, 0.5).astype(jnp.float32)
    post_add = jnp.where(is_g, 0.0, 0.5).astype(jnp.float32)

    whh = whh_ref[...]                                                # (H, 4H)

    h = jnp.zeros((BP, H), jnp.float32)
    c = jnp.zeros((BP, H), jnp.float32)

    # ---- Fully unrolled recurrence (T small & static). Critical path per
    #      step: tiny MXU matmul -> one EUP tanh -> gate selects -> VPU update.
    for t in range(T):
        gx = gates_x[t * BP:(t + 1) * BP, :]                          # (BP, 4H), aligned tile
        gates = gx + jnp.dot(h, whh, preferred_element_type=jnp.float32)
        acts = jnp.tanh(gates) * post_mul + post_add                  # (BP, 4H)
        i_g = acts[:, 0:H]
        f_g = acts[:, H:2 * H]
        g_g = acts[:, 2 * H:3 * H]
        o_g = acts[:, 3 * H:4 * H]
        c = f_g * c + i_g * g_g
        h = o_g * jnp.tanh(c)

    # Dropout(p=0.3) in eval mode is identity.
    # TODO(synk): add training-mode stochastic dropout via pltpu.prng_random_bits
    #             if training semantics are ever needed.
    out_ref[...] = (jnp.dot(h, wout_ref[...],
                            preferred_element_type=jnp.float32)
                    + bout_ref[...])


def prepare_params(params, out_lane_pad=128):
    """One-time prep: transpose weights, fold biases, fold the 0.5 sigmoid
    pre-scale into the i/f/o gate columns, lane-pad the output head."""
    H = params["embedding"].shape[1]
    O = params["w_out"].shape[0]
    H4 = 4 * H

    col = jnp.arange(H4)
    is_g = (col >= 2 * H) & (col < 3 * H)
    gate_scale = jnp.where(is_g, 1.0, 0.5).astype(jnp.float32)        # (4H,)

    wih_t = jnp.transpose(params["w_ih"]) * gate_scale[None, :]       # (H, 4H)
    whh_t = jnp.transpose(params["w_hh"]) * gate_scale[None, :]       # (H, 4H)
    bias = ((params["b_ih"] + params["b_hh"]) * gate_scale).reshape(1, H4)

    OP = max(out_lane_pad, O)
    wout_t = jnp.zeros((H, OP), jnp.float32).at[:, :O].set(
        jnp.transpose(params["w_out"]))
    bout = jnp.zeros((1, OP), jnp.float32).at[0, :O].set(params["b_out"])

    return {
        "emb": params["embedding"].astype(jnp.float32),               # (V, H)
        "wih_t": wih_t, "whh_t": whh_t, "bias": bias,                 # folded
        "wout_t": wout_t, "bout": bout,                               # lane-padded
    }


@partial(jax.jit, static_argnames=("output_size",))
def model_forward(x_tokens, prep, *, output_size):
    """x_tokens: int32 (B, T) token ids. Returns (B, output_size) f32 logits."""
    B, T = x_tokens.shape
    V, H = prep["emb"].shape
    H4 = prep["wih_t"].shape[1]
    OP = prep["wout_t"].shape[1]
    BP = ((B + 7) // 8) * 8                                           # sublane-pad batch

    tok_flat = x_tokens.reshape(-1).astype(jnp.int32)                 # (B*T,), free reshape

    # Advisory cost estimate (lets XLA schedule around this micro-kernel).
    flops = (2 * (T * BP) * H * H4            # hoisted input projection
             + T * 2 * BP * H * H4            # recurrence matmuls
             + 2 * BP * H * OP                # output head
             + 12 * T * BP * H4)              # elementwise gate math (approx)
    transcendentals = T * (BP * H4 + BP * H)
    bytes_accessed = 4 * (V * H + 2 * H * H4 + H4 + H * OP + OP + BP * OP) + 4 * B * T

    vmem = pl.BlockSpec(memory_space=pltpu.MemorySpace.VMEM)
    smem = pl.BlockSpec(memory_space=pltpu.MemorySpace.SMEM)

    out_pad = pl.pallas_call(
        partial(lstm_head_kernel, B=B, T=T, BP=BP),
        out_shape=jax.ShapeDtypeStruct((BP, OP), jnp.float32),
        in_specs=[smem, vmem, vmem, vmem, vmem, vmem, vmem],
        out_specs=vmem,
        scratch_shapes=[pltpu.VMEM((T * BP, H), jnp.float32)],
        compiler_params=pltpu.CompilerParams(vmem_limit_bytes=4 * 1024 * 1024),
        cost_estimate=pl.CostEstimate(flops=flops,
                                      transcendentals=transcendentals,
                                      bytes_accessed=bytes_accessed),
    )(tok_flat, prep["emb"], prep["wih_t"], prep["whh_t"], prep["bias"],
      prep["wout_t"], prep["bout"])

    return out_pad[:B, :output_size]


def init_params(key, vocab_size, hidden_size, output_size):
    ks = jax.random.split(key, 7)
    s = 1.0 / jnp.sqrt(hidden_size)
    return {
        "embedding": jax.random.normal(ks[0], (vocab_size, hidden_size),
                                       jnp.float32),
        "w_ih": jax.random.uniform(ks[1], (4 * hidden_size, hidden_size),
                                   jnp.float32, -s, s),
        "w_hh": jax.random.uniform(ks[2], (4 * hidden_size, hidden_size),
                                   jnp.float32, -s, s),
        "b_ih": jax.random.uniform(ks[3], (4 * hidden_size,), jnp.float32, -s, s),
        "b_hh": jax.random.uniform(ks[4], (4 * hidden_size,), jnp.float32, -s, s),
        "w_out": jax.random.uniform(ks[5], (output_size, hidden_size),
                                    jnp.float32, -s, s),
        "b_out": jax.random.uniform(ks[6], (output_size,), jnp.float32, -s, s),
    }


def reference_forward(x_tokens, params):
    """Pure-JAX reference matching PyTorch LSTM semantics (eval mode)."""
    emb = params["embedding"]
    w_ih, w_hh = params["w_ih"], params["w_hh"]
    b = params["b_ih"] + params["b_hh"]
    w_out, b_out = params["w_out"], params["b_out"]
    H = emb.shape[1]
    x = jnp.take(emb, x_tokens, axis=0)          # (B, T, H)
    B, T, _ = x.shape
    h = jnp.zeros((B, H), jnp.float32)
    c = jnp.zeros((B, H), jnp.float32)
    for t in range(T):
        g = x[:, t, :] @ w_ih.T + h @ w_hh.T + b
        i = jax.nn.sigmoid(g[:, 0:H])
        f = jax.nn.sigmoid(g[:, H:2 * H])
        gg = jnp.tanh(g[:, 2 * H:3 * H])
        o = jax.nn.sigmoid(g[:, 3 * H:4 * H])
        c = f * c + i * gg
        h = o * jnp.tanh(c)
    return h @ w_out.T + b_out


if __name__ == "__main__":
    vocab_size = 16     # input_size (embedding vocab)
    hidden_size = 32
    output_size = 8
    batch = 2
    seq = 8

    key = jax.random.PRNGKey(0)
    k_params, k_tok = jax.random.split(key)
    params = init_params(k_params, vocab_size, hidden_size, output_size)
    prep = prepare_params(params)
    x_tokens = jax.random.randint(k_tok, (batch, seq), 0, vocab_size,
                                  dtype=jnp.int32)

    out = model_forward(x_tokens, prep, output_size=output_size)
    out = jax.block_until_ready(out)
    assert out.shape == (batch, output_size)

    ref = reference_forward(x_tokens, params)
    np.testing.assert_allclose(np.asarray(out), np.asarray(ref),
                               rtol=1e-4, atol=1e-4)
    print("KERNEL_OK")
</pallas_src>

<mosaic_0001>
module attributes {stable_mosaic.version = 11 : i64} {
  func.func @lstm_head_kernel(%arg0: memref<16xi32, #tpu.memory_space<smem>>, %arg1: memref<16x32xf32, #tpu.memory_space<vmem>>, %arg2: memref<32x128xf32, #tpu.memory_space<vmem>>, %arg3: memref<32x128xf32, #tpu.memory_space<vmem>>, %arg4: memref<1x128xf32, #tpu.memory_space<vmem>>, %arg5: memref<32x128xf32, #tpu.memory_space<vmem>>, %arg6: memref<1x128xf32, #tpu.memory_space<vmem>>, %arg7: memref<8x128xf32, #tpu.memory_space<vmem>>, %arg8: memref<64x32xf32, #tpu.memory_space<vmem>>) attributes {dimension_semantics = [], scalar_prefetch = 0 : i64, scratch_operands = 1 : i64, tpu.core_type = #tpu.core_type<tc>} {
    %cst = arith.constant 0.000000e+00 : f32
    %0 = vector.broadcast %cst : f32 to vector<64x32xf32>
    %c0 = arith.constant 0 : index
    %c0_0 = arith.constant 0 : index
    %1 = vector.load %arg8[%c0, %c0_0] : memref<64x32xf32, #tpu.memory_space<vmem>>, vector<64x32xf32>
    tpu.vector_store %arg8[%c0, %c0_0], %0 {strides = array<i32>} : memref<64x32xf32, #tpu.memory_space<vmem>>, vector<64x32xf32>,
    %c0_1 = arith.constant 0 : index
    %2 = memref.load %arg0[%c0_1] : memref<16xi32, #tpu.memory_space<smem>>
    %c0_i32 = arith.constant 0 : i32
    %3 = arith.maxsi %2, %c0_i32 : i32
    %c15_i32 = arith.constant 15 : i32
    %4 = arith.minsi %3, %c15_i32 : i32
    %5 = arith.index_cast %4 : i32 to index
    %c0_2 = arith.constant 0 : index
    %6 = vector.load %arg1[%5, %c0_2] : memref<16x32xf32, #tpu.memory_space<vmem>>, vector<1x32xf32>
    %c0_3 = arith.constant 0 : index
    %c0_4 = arith.constant 0 : index
    %7 = vector.load %arg8[%c0_3, %c0_4] : memref<64x32xf32, #tpu.memory_space<vmem>>, vector<1x32xf32>
    tpu.vector_store %arg8[%c0_3, %c0_4], %6 {strides = array<i32>} : memref<64x32xf32, #tpu.memory_space<vmem>>, vector<1x32xf32>,
    %c8 = arith.constant 8 : index
    %8 = memref.load %arg0[%c8] : memref<16xi32, #tpu.memory_space<smem>>
    %c0_i32_5 = arith.constant 0 : i32
    %9 = arith.maxsi %8, %c0_i32_5 : i32
    %c15_i32_6 = arith.constant 15 : i32
    %10 = arith.minsi %9, %c15_i32_6 : i32
    %11 = arith.index_cast %10 : i32 to index
    %c0_7 = arith.constant 0 : index
    %12 = vector.load %arg1[%11, %c0_7] : memref<16x32xf32, #tpu.memory_space<vmem>>, vector<1x32xf32>
    %c1 = arith.constant 1 : index
    %c0_8 = arith.constant 0 : index
    %13 = vector.load %arg8[%c1, %c0_8] : memref<64x32xf32, #tpu.memory_space<vmem>>, vector<1x32xf32>
    tpu.vector_store %arg8[%c1, %c0_8], %12 {strides = array<i32>} : memref<64x32xf32, #tpu.memory_space<vmem>>, vector<1x32xf32>,
    %c1_9 = arith.constant 1 : index
    %14 = memref.load %arg0[%c1_9] : memref<16xi32, #tpu.memory_space<smem>>
    %c0_i32_10 = arith.constant 0 : i32
    %15 = arith.maxsi %14, %c0_i32_10 : i32
    %c15_i32_11 = arith.constant 15 : i32
    %16 = arith.minsi %15, %c15_i32_11 : i32
    %17 = arith.index_cast %16 : i32 to index
    %c0_12 = arith.constant 0 : index
    %18 = vector.load %arg1[%17, %c0_12] : memref<16x32xf32, #tpu.memory_space<vmem>>, vector<1x32xf32>
    %c8_13 = arith.constant 8 : index
    %c0_14 = arith.constant 0 : index
    %19 = vector.load %arg8[%c8_13, %c0_14] : memref<64x32xf32, #tpu.memory_space<vmem>>, vector<1x32xf32>
    tpu.vector_store %arg8[%c8_13, %c0_14], %18 {strides = array<i32>} : memref<64x32xf32, #tpu.memory_space<vmem>>, vector<1x32xf32>,
    %c9 = arith.constant 9 : index
    %20 = memref.load %arg0[%c9] : memref<16xi32, #tpu.memory_space<smem>>
    %c0_i32_15 = arith.constant 0 : i32
    %21 = arith.maxsi %20, %c0_i32_15 : i32
    %c15_i32_16 = arith.constant 15 : i32
    %22 = arith.minsi %21, %c15_i32_16 : i32
    %23 = arith.index_cast %22 : i32 to index
    %c0_17 = arith.constant 0 : index
    %24 = vector.load %arg1[%23, %c0_17] : memref<16x32xf32, #tpu.memory_space<vmem>>, vector<1x32xf32>
    %c9_18 = arith.constant 9 : index
    %c0_19 = arith.constant 0 : index
    %25 = vector.load %arg8[%c9_18, %c0_19] : memref<64x32xf32, #tpu.memory_space<vmem>>, vector<1x32xf32>
    tpu.vector_store %arg8[%c9_18, %c0_19], %24 {strides = array<i32>} : memref<64x32xf32, #tpu.memory_space<vmem>>, vector<1x32xf32>,
    %c2 = arith.constant 2 : index
    %26 = memref.load %arg0[%c2] : memref<16xi32, #tpu.memory_space<smem>>
    %c0_i32_20 = arith.constant 0 : i32
    %27 = arith.maxsi %26, %c0_i32_20 : i32
    %c15_i32_21 = arith.constant 15 : i32
    %28 = arith.minsi %27, %c15_i32_21 : i32
    %29 = arith.index_cast %28 : i32 to index
    %c0_22 = arith.constant 0 : index
    %30 = vector.load %arg1[%29, %c0_22] : memref<16x32xf32, #tpu.memory_space<vmem>>, vector<1x32xf32>
    %c16 = arith.constant 16 : index
    %c0_23 = arith.constant 0 : index
    %31 = vector.load %arg8[%c16, %c0_23] : memref<64x32xf32, #tpu.memory_space<vmem>>, vector<1x32xf32>
    tpu.vector_store %arg8[%c16, %c0_23], %30 {strides = array<i32>} : memref<64x32xf32, #tpu.memory_space<vmem>>, vector<1x32xf32>,
    %c10 = arith.constant 10 : index
    %32 = memref.load %arg0[%c10] : memref<16xi32, #tpu.memory_space<smem>>
    %c0_i32_24 = arith.constant 0 : i32
    %33 = arith.maxsi %32, %c0_i32_24 : i32
    %c15_i32_25 = arith.constant 15 : i32
    %34 = arith.minsi %33, %c15_i32_25 : i32
    %35 = arith.index_cast %34 : i32 to index
    %c0_26 = arith.constant 0 : index
    %36 = vector.load %arg1[%35, %c0_26] : memref<16x32xf32, #tpu.memory_space<vmem>>, vector<1x32xf32>
    %c17 = arith.constant 17 : index
    %c0_27 = arith.constant 0 : index
    %37 = vector.load %arg8[%c17, %c0_27] : memref<64x32xf32, #tpu.memory_space<vmem>>, vector<1x32xf32>
    tpu.vector_store %arg8[%c17, %c0_27], %36 {strides = array<i32>} : memref<64x32xf32, #tpu.memory_space<vmem>>, vector<1x32xf32>,
    %c3 = arith.constant 3 : index
    %38 = memref.load %arg0[%c3] : memref<16xi32, #tpu.memory_space<smem>>
    %c0_i32_28 = arith.constant 0 : i32
    %39 = arith.maxsi %38, %c0_i32_28 : i32
    %c15_i32_29 = arith.constant 15 : i32
    %40 = arith.minsi %39, %c15_i32_29 : i32
    %41 = arith.index_cast %40 : i32 to index
    %c0_30 = arith.constant 0 : index
    %42 = vector.load %arg1[%41, %c0_30] : memref<16x32xf32, #tpu.memory_space<vmem>>, vector<1x32xf32>
    %c24 = arith.constant 24 : index
    %c0_31 = arith.constant 0 : index
    %43 = vector.load %arg8[%c24, %c0_31] : memref<64x32xf32, #tpu.memory_space<vmem>>, vector<1x32xf32>
    tpu.vector_store %arg8[%c24, %c0_31], %42 {strides = array<i32>} : memref<64x32xf32, #tpu.memory_space<vmem>>, vector<1x32xf32>,
    %c11 = arith.constant 11 : index
    %44 = memref.load %arg0[%c11] : memref<16xi32, #tpu.memory_space<smem>>
    %c0_i32_32 = arith.constant 0 : i32
    %45 = arith.maxsi %44, %c0_i32_32 : i32
    %c15_i32_33 = arith.constant 15 : i32
    %46 = arith.minsi %45, %c15_i32_33 : i32
    %47 = arith.index_cast %46 : i32 to index
    %c0_34 = arith.constant 0 : index
    %48 = vector.load %arg1[%47, %c0_34] : memref<16x32xf32, #tpu.memory_space<vmem>>, vector<1x32xf32>
    %c25 = arith.constant 25 : index
    %c0_35 = arith.constant 0 : index
    %49 = vector.load %arg8[%c25, %c0_35] : memref<64x32xf32, #tpu.memory_space<vmem>>, vector<1x32xf32>
    tpu.vector_store %arg8[%c25, %c0_35], %48 {strides = array<i32>} : memref<64x32xf32, #tpu.memory_space<vmem>>, vector<1x32xf32>,
    %c4 = arith.constant 4 : index
    %50 = memref.load %arg0[%c4] : memref<16xi32, #tpu.memory_space<smem>>
    %c0_i32_36 = arith.constant 0 : i32
    %51 = arith.maxsi %50, %c0_i32_36 : i32
    %c15_i32_37 = arith.constant 15 : i32
    %52 = arith.minsi %51, %c15_i32_37 : i32
    %53 = arith.index_cast %52 : i32 to index
    %c0_38 = arith.constant 0 : index
    %54 = vector.load %arg1[%53, %c0_38] : memref<16x32xf32, #tpu.memory_space<vmem>>, vector<1x32xf32>
    %c32 = arith.constant 32 : index
    %c0_39 = arith.constant 0 : index
    %55 = vector.load %arg8[%c32, %c0_39] : memref<64x32xf32, #tpu.memory_space<vmem>>, vector<1x32xf32>
    tpu.vector_store %arg8[%c32, %c0_39], %54 {strides = array<i32>} : memref<64x32xf32, #tpu.memory_space<vmem>>, vector<1x32xf32>,
    %c12 = arith.constant 12 : index
    %56 = memref.load %arg0[%c12] : memref<16xi32, #tpu.memory_space<smem>>
    %c0_i32_40 = arith.constant 0 : i32
    %57 = arith.maxsi %56, %c0_i32_40 : i32
    %c15_i32_41 = arith.constant 15 : i32
    %58 = arith.minsi %57, %c15_i32_41 : i32
    %59 = arith.index_cast %58 : i32 to index
    %c0_42 = arith.constant 0 : index
    %60 = vector.load %arg1[%59, %c0_42] : memref<16x32xf32, #tpu.memory_space<vmem>>, vector<1x32xf32>
    %c33 = arith.constant 33 : index
    %c0_43 = arith.constant 0 : index
    %61 = vector.load %arg8[%c33, %c0_43] : memref<64x32xf32, #tpu.memory_space<vmem>>, vector<1x32xf32>
    tpu.vector_store %arg8[%c33, %c0_43], %60 {strides = array<i32>} : memref<64x32xf32, #tpu.memory_space<vmem>>, vector<1x32xf32>,
    %c5 = arith.constant 5 : index
    %62 = memref.load %arg0[%c5] : memref<16xi32, #tpu.memory_space<smem>>
    %c0_i32_44 = arith.constant 0 : i32
    %63 = arith.maxsi %62, %c0_i32_44 : i32
    %c15_i32_45 = arith.constant 15 : i32
    %64 = arith.minsi %63, %c15_i32_45 : i32
    %65 = arith.index_cast %64 : i32 to index
    %c0_46 = arith.constant 0 : index
    %66 = vector.load %arg1[%65, %c0_46] : memref<16x32xf32, #tpu.memory_space<vmem>>, vector<1x32xf32>
    %c40 = arith.constant 40 : index
    %c0_47 = arith.constant 0 : index
    %67 = vector.load %arg8[%c40, %c0_47] : memref<64x32xf32, #tpu.memory_space<vmem>>, vector<1x32xf32>
    tpu.vector_store %arg8[%c40, %c0_47], %66 {strides = array<i32>} : memref<64x32xf32, #tpu.memory_space<vmem>>, vector<1x32xf32>,
    %c13 = arith.constant 13 : index
    %68 = memref.load %arg0[%c13] : memref<16xi32, #tpu.memory_space<smem>>
    %c0_i32_48 = arith.constant 0 : i32
    %69 = arith.maxsi %68, %c0_i32_48 : i32
    %c15_i32_49 = arith.constant 15 : i32
    %70 = arith.minsi %69, %c15_i32_49 : i32
    %71 = arith.index_cast %70 : i32 to index
    %c0_50 = arith.constant 0 : index
    %72 = vector.load %arg1[%71, %c0_50] : memref<16x32xf32, #tpu.memory_space<vmem>>, vector<1x32xf32>
    %c41 = arith.constant 41 : index
    %c0_51 = arith.constant 0 : index
    %73 = vector.load %arg8[%c41, %c0_51] : memref<64x32xf32, #tpu.memory_space<vmem>>, vector<1x32xf32>
    tpu.vector_store %arg8[%c41, %c0_51], %72 {strides = array<i32>} : memref<64x32xf32, #tpu.memory_space<vmem>>, vector<1x32xf32>,
    %c6 = arith.constant 6 : index
    %74 = memref.load %arg0[%c6] : memref<16xi32, #tpu.memory_space<smem>>
    %c0_i32_52 = arith.constant 0 : i32
    %75 = arith.maxsi %74, %c0_i32_52 : i32
    %c15_i32_53 = arith.constant 15 : i32
    %76 = arith.minsi %75, %c15_i32_53 : i32
    %77 = arith.index_cast %76 : i32 to index
    %c0_54 = arith.constant 0 : index
    %78 = vector.load %arg1[%77, %c0_54] : memref<16x32xf32, #tpu.memory_space<vmem>>, vector<1x32xf32>
    %c48 = arith.constant 48 : index
    %c0_55 = arith.constant 0 : index
    %79 = vector.load %arg8[%c48, %c0_55] : memref<64x32xf32, #tpu.memory_space<vmem>>, vector<1x32xf32>
    tpu.vector_store %arg8[%c48, %c0_55], %78 {strides = array<i32>} : memref<64x32xf32, #tpu.memory_space<vmem>>, vector<1x32xf32>,
    %c14 = arith.constant 14 : index
    %80 = memref.load %arg0[%c14] : memref<16xi32, #tpu.memory_space<smem>>
    %c0_i32_56 = arith.constant 0 : i32
    %81 = arith.maxsi %80, %c0_i32_56 : i32
    %c15_i32_57 = arith.constant 15 : i32
    %82 = arith.minsi %81, %c15_i32_57 : i32
    %83 = arith.index_cast %82 : i32 to index
    %c0_58 = arith.constant 0 : index
    %84 = vector.load %arg1[%83, %c0_58] : memref<16x32xf32, #tpu.memory_space<vmem>>, vector<1x32xf32>
    %c49 = arith.constant 49 : index
    %c0_59 = arith.constant 0 : index
    %85 = vector.load %arg8[%c49, %c0_59] : memref<64x32xf32, #tpu.memory_space<vmem>>, vector<1x32xf32>
    tpu.vector_store %arg8[%c49, %c0_59], %84 {strides = array<i32>} : memref<64x32xf32, #tpu.memory_space<vmem>>, vector<1x32xf32>,
    %c7 = arith.constant 7 : index
    %86 = memref.load %arg0[%c7] : memref<16xi32, #tpu.memory_space<smem>>
    %c0_i32_60 = arith.constant 0 : i32
    %87 = arith.maxsi %86, %c0_i32_60 : i32
    %c15_i32_61 = arith.constant 15 : i32
    %88 = arith.minsi %87, %c15_i32_61 : i32
    %89 = arith.index_cast %88 : i32 to index
    %c0_62 = arith.constant 0 : index
    %90 = vector.load %arg1[%89, %c0_62] : memref<16x32xf32, #tpu.memory_space<vmem>>, vector<1x32xf32>
    %c56 = arith.constant 56 : index
    %c0_63 = arith.constant 0 : index
    %91 = vector.load %arg8[%c56, %c0_63] : memref<64x32xf32, #tpu.memory_space<vmem>>, vector<1x32xf32>
    tpu.vector_store %arg8[%c56, %c0_63], %90 {strides = array<i32>} : memref<64x32xf32, #tpu.memory_space<vmem>>, vector<1x32xf32>,
    %c15 = arith.constant 15 : index
    %92 = memref.load %arg0[%c15] : memref<16xi32, #tpu.memory_space<smem>>
    %c0_i32_64 = arith.constant 0 : i32
    %93 = arith.maxsi %92, %c0_i32_64 : i32
    %c15_i32_65 = arith.constant 15 : i32
    %94 = arith.minsi %93, %c15_i32_65 : i32
    %95 = arith.index_cast %94 : i32 to index
    %c0_66 = arith.constant 0 : index
    %96 = vector.load %arg1[%95, %c0_66] : memref<16x32xf32, #tpu.memory_space<vmem>>, vector<1x32xf32>
    %c57 = arith.constant 57 : index
    %c0_67 = arith.constant 0 : index
    %97 = vector.load %arg8[%c57, %c0_67] : memref<64x32xf32, #tpu.memory_space<vmem>>, vector<1x32xf32>
    tpu.vector_store %arg8[%c57, %c0_67], %96 {strides = array<i32>} : memref<64x32xf32, #tpu.memory_space<vmem>>, vector<1x32xf32>,
    %c0_68 = arith.constant 0 : index
    %c0_69 = arith.constant 0 : index
    %98 = vector.load %arg8[%c0_68, %c0_69] : memref<64x32xf32, #tpu.memory_space<vmem>>, vector<64x32xf32>
    %c0_70 = arith.constant 0 : index
    %c0_71 = arith.constant 0 : index
    %99 = vector.load %arg2[%c0_70, %c0_71] : memref<32x128xf32, #tpu.memory_space<vmem>>, vector<32x128xf32>
    %cst_72 = arith.constant dense<0.000000e+00> : vector<64x128xf32>
    %100 = tpu.matmul %98, %99, %cst_72 {dimension_numbers = #tpu.dot_dimension_numbers<[1], [0], [0], [1], [0, 0, 1, 1], [], []>} : vector<64x32xf32>, vector<32x128xf32>, vector<64x128xf32> -> vector<64x128xf32>
    %c0_73 = arith.constant 0 : index
    %c0_74 = arith.constant 0 : index
    %101 = vector.load %arg4[%c0_73, %c0_74] : memref<1x128xf32, #tpu.memory_space<vmem>>, vector<1x128xf32>
    %102 = vector.broadcast %101 : vector<1x128xf32> to vector<64x128xf32>
    %103 = arith.addf %100, %102 : vector<64x128xf32>
    %104 = tpu.iota {dimensions = array<i32: 1>} : vector<1x128xi32>
    %c64_i32 = arith.constant 64 : i32
    %105 = vector.broadcast %c64_i32 : i32 to vector<1x128xi32>
    %106 = arith.cmpi sge, %104, %105 : vector<1x128xi32>
    %c96_i32 = arith.constant 96 : i32
    %107 = vector.broadcast %c96_i32 : i32 to vector<1x128xi32>
    %108 = arith.cmpi slt, %104, %107 : vector<1x128xi32>
    %109 = arith.andi %106, %108 : vector<1x128xi1>
    %cst_75 = arith.constant 1.000000e+00 : f32
    %cst_76 = arith.constant 5.000000e-01 : f32
    %110 = vector.broadcast %cst_75 : f32 to vector<1x128xf32>
    %111 = vector.broadcast %cst_76 : f32 to vector<1x128xf32>
    %112 = arith.select %109, %110, %111 : vector<1x128xi1>, vector<1x128xf32>
    %cst_77 = arith.constant 0.000000e+00 : f32
    %cst_78 = arith.constant 5.000000e-01 : f32
    %113 = vector.broadcast %cst_77 : f32 to vector<1x128xf32>
    %114 = vector.broadcast %cst_78 : f32 to vector<1x128xf32>
    %115 = arith.select %109, %113, %114 : vector<1x128xi1>, vector<1x128xf32>
    %c0_79 = arith.constant 0 : index
    %c0_80 = arith.constant 0 : index
    %116 = vector.load %arg3[%c0_79, %c0_80] : memref<32x128xf32, #tpu.memory_space<vmem>>, vector<32x128xf32>
    %cst_81 = arith.constant 0.000000e+00 : f32
    %117 = vector.broadcast %cst_81 : f32 to vector<8x32xf32>
    %cst_82 = arith.constant 0.000000e+00 : f32
    %118 = vector.broadcast %cst_82 : f32 to vector<8x32xf32>
    %119 = vector.extract_strided_slice %103 {offsets = [0, 0], sizes = [8, 128], strides = [1, 1]} : vector<64x128xf32> to vector<8x128xf32>
    %cst_83 = arith.constant dense<0.000000e+00> : vector<8x128xf32>
    %120 = tpu.matmul %117, %116, %cst_83 {dimension_numbers = #tpu.dot_dimension_numbers<[1], [0], [0], [1], [0, 0, 1, 1], [], []>} : vector<8x32xf32>, vector<32x128xf32>, vector<8x128xf32> -> vector<8x128xf32>
    %121 = arith.addf %119, %120 : vector<8x128xf32>
    %122 = math.tanh %121 : vector<8x128xf32>
    %123 = vector.broadcast %112 : vector<1x128xf32> to vector<8x128xf32>
    %124 = arith.mulf %122, %123 : vector<8x128xf32>
    %125 = vector.broadcast %115 : vector<1x128xf32> to vector<8x128xf32>
    %126 = arith.addf %124, %125 : vector<8x128xf32>
    %127 = vector.extract_strided_slice %126 {offsets = [0, 0], sizes = [8, 32], strides = [1, 1]} : vector<8x128xf32> to vector<8x32xf32>
    %128 = vector.extract_strided_slice %126 {offsets = [0, 32], sizes = [8, 32], strides = [1, 1]} : vector<8x128xf32> to vector<8x32xf32>
    %129 = vector.extract_strided_slice %126 {offsets = [0, 64], sizes = [8, 32], strides = [1, 1]} : vector<8x128xf32> to vector<8x32xf32>
    %130 = vector.extract_strided_slice %126 {offsets = [0, 96], sizes = [8, 32], strides = [1, 1]} : vector<8x128xf32> to vector<8x32xf32>
    %131 = arith.mulf %128, %118 : vector<8x32xf32>
    %132 = arith.mulf %127, %129 : vector<8x32xf32>
    %133 = arith.addf %131, %132 : vector<8x32xf32>
    %134 = math.tanh %133 : vector<8x32xf32>
    %135 = arith.mulf %130, %134 : vector<8x32xf32>
    %136 = vector.extract_strided_slice %103 {offsets = [8, 0], sizes = [8, 128], strides = [1, 1]} : vector<64x128xf32> to vector<8x128xf32>
    %cst_84 = arith.constant dense<0.000000e+00> : vector<8x128xf32>
    %137 = tpu.matmul %135, %116, %cst_84 {dimension_numbers = #tpu.dot_dimension_numbers<[1], [0], [0], [1], [0, 0, 1, 1], [], []>} : vector<8x32xf32>, vector<32x128xf32>, vector<8x128xf32> -> vector<8x128xf32>
    %138 = arith.addf %136, %137 : vector<8x128xf32>
    %139 = math.tanh %138 : vector<8x128xf32>
    %140 = vector.broadcast %112 : vector<1x128xf32> to vector<8x128xf32>
    %141 = arith.mulf %139, %140 : vector<8x128xf32>
    %142 = vector.broadcast %115 : vector<1x128xf32> to vector<8x128xf32>
    %143 = arith.addf %141, %142 : vector<8x128xf32>
    %144 = vector.extract_strided_slice %143 {offsets = [0, 0], sizes = [8, 32], strides = [1, 1]} : vector<8x128xf32> to vector<8x32xf32>
    %145 = vector.extract_strided_slice %143 {offsets = [0, 32], sizes = [8, 32], strides = [1, 1]} : vector<8x128xf32> to vector<8x32xf32>
    %146 = vector.extract_strided_slice %143 {offsets = [0, 64], sizes = [8, 32], strides = [1, 1]} : vector<8x128xf32> to vector<8x32xf32>
    %147 = vector.extract_strided_slice %143 {offsets = [0, 96], sizes = [8, 32], strides = [1, 1]} : vector<8x128xf32> to vector<8x32xf32>
    %148 = arith.mulf %145, %133 : vector<8x32xf32>
    %149 = arith.mulf %144, %146 : vector<8x32xf32>
    %150 = arith.addf %148, %149 : vector<8x32xf32>
    %151 = math.tanh %150 : vector<8x32xf32>
    %152 = arith.mulf %147, %151 : vector<8x32xf32>
    %153 = vector.extract_strided_slice %103 {offsets = [16, 0], sizes = [8, 128], strides = [1, 1]} : vector<64x128xf32> to vector<8x128xf32>
    %cst_85 = arith.constant dense<0.000000e+00> : vector<8x128xf32>
    %154 = tpu.matmul %152, %116, %cst_85 {dimension_numbers = #tpu.dot_dimension_numbers<[1], [0], [0], [1], [0, 0, 1, 1], [], []>} : vector<8x32xf32>, vector<32x128xf32>, vector<8x128xf32> -> vector<8x128xf32>
    %155 = arith.addf %153, %154 : vector<8x128xf32>
    %156 = math.tanh %155 : vector<8x128xf32>
    %157 = vector.broadcast %112 : vector<1x128xf32> to vector<8x128xf32>
    %158 = arith.mulf %156, %157 : vector<8x128xf32>
    %159 = vector.broadcast %115 : vector<1x128xf32> to vector<8x128xf32>
    %160 = arith.addf %158, %159 : vector<8x128xf32>
    %161 = vector.extract_strided_slice %160 {offsets = [0, 0], sizes = [8, 32], strides = [1, 1]} : vector<8x128xf32> to vector<8x32xf32>
    %162 = vector.extract_strided_slice %160 {offsets = [0, 32], sizes = [8, 32], strides = [1, 1]} : vector<8x128xf32> to vector<8x32xf32>
    %163 = vector.extract_strided_slice %160 {offsets = [0, 64], sizes = [8, 32], strides = [1, 1]} : vector<8x128xf32> to vector<8x32xf32>
    %164 = vector.extract_strided_slice %160 {offsets = [0, 96], sizes = [8, 32], strides = [1, 1]} : vector<8x128xf32> to vector<8x32xf32>
    %165 = arith.mulf %162, %150 : vector<8x32xf32>
    %166 = arith.mulf %161, %163 : vector<8x32xf32>
    %167 = arith.addf %165, %166 : vector<8x32xf32>
    %168 = math.tanh %167 : vector<8x32xf32>
    %169 = arith.mulf %164, %168 : vector<8x32xf32>
    %170 = vector.extract_strided_slice %103 {offsets = [24, 0], sizes = [8, 128], strides = [1, 1]} : vector<64x128xf32> to vector<8x128xf32>
    %cst_86 = arith.constant dense<0.000000e+00> : vector<8x128xf32>
    %171 = tpu.matmul %169, %116, %cst_86 {dimension_numbers = #tpu.dot_dimension_numbers<[1], [0], [0], [1], [0, 0, 1, 1], [], []>} : vector<8x32xf32>, vector<32x128xf32>, vector<8x128xf32> -> vector<8x128xf32>
    %172 = arith.addf %170, %171 : vector<8x128xf32>
    %173 = math.tanh %172 : vector<8x128xf32>
    %174 = vector.broadcast %112 : vector<1x128xf32> to vector<8x128xf32>
    %175 = arith.mulf %173, %174 : vector<8x128xf32>
    %176 = vector.broadcast %115 : vector<1x128xf32> to vector<8x128xf32>
    %177 = arith.addf %175, %176 : vector<8x128xf32>
    %178 = vector.extract_strided_slice %177 {offsets = [0, 0], sizes = [8, 32], strides = [1, 1]} : vector<8x128xf32> to vector<8x32xf32>
    %179 = vector.extract_strided_slice %177 {offsets = [0, 32], sizes = [8, 32], strides = [1, 1]} : vector<8x128xf32> to vector<8x32xf32>
    %180 = vector.extract_strided_slice %177 {offsets = [0, 64], sizes = [8, 32], strides = [1, 1]} : vector<8x128xf32> to vector<8x32xf32>
    %181 = vector.extract_strided_slice %177 {offsets = [0, 96], sizes = [8, 32], strides = [1, 1]} : vector<8x128xf32> to vector<8x32xf32>
    %182 = arith.mulf %179, %167 : vector<8x32xf32>
    %183 = arith.mulf %178, %180 : vector<8x32xf32>
    %184 = arith.addf %182, %183 : vector<8x32xf32>
    %185 = math.tanh %184 : vector<8x32xf32>
    %186 = arith.mulf %181, %185 : vector<8x32xf32>
    %187 = vector.extract_strided_slice %103 {offsets = [32, 0], sizes = [8, 128], strides = [1, 1]} : vector<64x128xf32> to vector<8x128xf32>
    %cst_87 = arith.constant dense<0.000000e+00> : vector<8x128xf32>
    %188 = tpu.matmul %186, %116, %cst_87 {dimension_numbers = #tpu.dot_dimension_numbers<[1], [0], [0], [1], [0, 0, 1, 1], [], []>} : vector<8x32xf32>, vector<32x128xf32>, vector<8x128xf32> -> vector<8x128xf32>
    %189 = arith.addf %187, %188 : vector<8x128xf32>
    %190 = math.tanh %189 : vector<8x128xf32>
    %191 = vector.broadcast %112 : vector<1x128xf32> to vector<8x128xf32>
    %192 = arith.mulf %190, %191 : vector<8x128xf32>
    %193 = vector.broadcast %115 : vector<1x128xf32> to vector<8x128xf32>
    %194 = arith.addf %192, %193 : vector<8x128xf32>
    %195 = vector.extract_strided_slice %194 {offsets = [0, 0], sizes = [8, 32], strides = [1, 1]} : vector<8x128xf32> to vector<8x32xf32>
    %196 = vector.extract_strided_slice %194 {offsets = [0, 32], sizes = [8, 32], strides = [1, 1]} : vector<8x128xf32> to vector<8x32xf32>
    %197 = vector.extract_strided_slice %194 {offsets = [0, 64], sizes = [8, 32], strides = [1, 1]} : vector<8x128xf32> to vector<8x32xf32>
    %198 = vector.extract_strided_slice %194 {offsets = [0, 96], sizes = [8, 32], strides = [1, 1]} : vector<8x128xf32> to vector<8x32xf32>
    %199 = arith.mulf %196, %184 : vector<8x32xf32>
    %200 = arith.mulf %195, %197 : vector<8x32xf32>
    %201 = arith.addf %199, %200 : vector<8x32xf32>
    %202 = math.tanh %201 : vector<8x32xf32>
    %203 = arith.mulf %198, %202 : vector<8x32xf32>
    %204 = vector.extract_strided_slice %103 {offsets = [40, 0], sizes = [8, 128], strides = [1, 1]} : vector<64x128xf32> to vector<8x128xf32>
    %cst_88 = arith.constant dense<0.000000e+00> : vector<8x128xf32>
    %205 = tpu.matmul %203, %116, %cst_88 {dimension_numbers = #tpu.dot_dimension_numbers<[1], [0], [0], [1], [0, 0, 1, 1], [], []>} : vector<8x32xf32>, vector<32x128xf32>, vector<8x128xf32> -> vector<8x128xf32>
    %206 = arith.addf %204, %205 : vector<8x128xf32>
    %207 = math.tanh %206 : vector<8x128xf32>
    %208 = vector.broadcast %112 : vector<1x128xf32> to vector<8x128xf32>
    %209 = arith.mulf %207, %208 : vector<8x128xf32>
    %210 = vector.broadcast %115 : vector<1x128xf32> to vector<8x128xf32>
    %211 = arith.addf %209, %210 : vector<8x128xf32>
    %212 = vector.extract_strided_slice %211 {offsets = [0, 0], sizes = [8, 32], strides = [1, 1]} : vector<8x128xf32> to vector<8x32xf32>
    %213 = vector.extract_strided_slice %211 {offsets = [0, 32], sizes = [8, 32], strides = [1, 1]} : vector<8x128xf32> to vector<8x32xf32>
    %214 = vector.extract_strided_slice %211 {offsets = [0, 64], sizes = [8, 32], strides = [1, 1]} : vector<8x128xf32> to vector<8x32xf32>
    %215 = vector.extract_strided_slice %211 {offsets = [0, 96], sizes = [8, 32], strides = [1, 1]} : vector<8x128xf32> to vector<8x32xf32>
    %216 = arith.mulf %213, %201 : vector<8x32xf32>
    %217 = arith.mulf %212, %214 : vector<8x32xf32>
    %218 = arith.addf %216, %217 : vector<8x32xf32>
    %219 = math.tanh %218 : vector<8x32xf32>
    %220 = arith.mulf %215, %219 : vector<8x32xf32>
    %221 = vector.extract_strided_slice %103 {offsets = [48, 0], sizes = [8, 128], strides = [1, 1]} : vector<64x128xf32> to vector<8x128xf32>
    %cst_89 = arith.constant dense<0.000000e+00> : vector<8x128xf32>
    %222 = tpu.matmul %220, %116, %cst_89 {dimension_numbers = #tpu.dot_dimension_numbers<[1], [0], [0], [1], [0, 0, 1, 1], [], []>} : vector<8x32xf32>, vector<32x128xf32>, vector<8x128xf32> -> vector<8x128xf32>
    %223 = arith.addf %221, %222 : vector<8x128xf32>
    %224 = math.tanh %223 : vector<8x128xf32>
    %225 = vector.broadcast %112 : vector<1x128xf32> to vector<8x128xf32>
    %226 = arith.mulf %224, %225 : vector<8x128xf32>
    %227 = vector.broadcast %115 : vector<1x128xf32> to vector<8x128xf32>
    %228 = arith.addf %226, %227 : vector<8x128xf32>
    %229 = vector.extract_strided_slice %228 {offsets = [0, 0], sizes = [8, 32], strides = [1, 1]} : vector<8x128xf32> to vector<8x32xf32>
    %230 = vector.extract_strided_slice %228 {offsets = [0, 32], sizes = [8, 32], strides = [1, 1]} : vector<8x128xf32> to vector<8x32xf32>
    %231 = vector.extract_strided_slice %228 {offsets = [0, 64], sizes = [8, 32], strides = [1, 1]} : vector<8x128xf32> to vector<8x32xf32>
    %232 = vector.extract_strided_slice %228 {offsets = [0, 96], sizes = [8, 32], strides = [1, 1]} : vector<8x128xf32> to vector<8x32xf32>
    %233 = arith.mulf %230, %218 : vector<8x32xf32>
    %234 = arith.mulf %229, %231 : vector<8x32xf32>
    %235 = arith.addf %233, %234 : vector<8x32xf32>
    %236 = math.tanh %235 : vector<8x32xf32>
    %237 = arith.mulf %232, %236 : vector<8x32xf32>
    %238 = vector.extract_strided_slice %103 {offsets = [56, 0], sizes = [8, 128], strides = [1, 1]} : vector<64x128xf32> to vector<8x128xf32>
    %cst_90 = arith.constant dense<0.000000e+00> : vector<8x128xf32>
    %239 = tpu.matmul %237, %116, %cst_90 {dimension_numbers = #tpu.dot_dimension_numbers<[1], [0], [0], [1], [0, 0, 1, 1], [], []>} : vector<8x32xf32>, vector<32x128xf32>, vector<8x128xf32> -> vector<8x128xf32>
    %240 = arith.addf %238, %239 : vector<8x128xf32>
    %241 = math.tanh %240 : vector<8x128xf32>
    %242 = vector.broadcast %112 : vector<1x128xf32> to vector<8x128xf32>
    %243 = arith.mulf %241, %242 : vector<8x128xf32>
    %244 = vector.broadcast %115 : vector<1x128xf32> to vector<8x128xf32>
    %245 = arith.addf %243, %244 : vector<8x128xf32>
    %246 = vector.extract_strided_slice %245 {offsets = [0, 0], sizes = [8, 32], strides = [1, 1]} : vector<8x128xf32> to vector<8x32xf32>
    %247 = vector.extract_strided_slice %245 {offsets = [0, 32], sizes = [8, 32], strides = [1, 1]} : vector<8x128xf32> to vector<8x32xf32>
    %248 = vector.extract_strided_slice %245 {offsets = [0, 64], sizes = [8, 32], strides = [1, 1]} : vector<8x128xf32> to vector<8x32xf32>
    %249 = vector.extract_strided_slice %245 {offsets = [0, 96], sizes = [8, 32], strides = [1, 1]} : vector<8x128xf32> to vector<8x32xf32>
    %250 = arith.mulf %247, %235 : vector<8x32xf32>
    %251 = arith.mulf %246, %248 : vector<8x32xf32>
    %252 = arith.addf %250, %251 : vector<8x32xf32>
    %253 = math.tanh %252 : vector<8x32xf32>
    %254 = arith.mulf %249, %253 : vector<8x32xf32>
    %c0_91 = arith.constant 0 : index
    %c0_92 = arith.constant 0 : index
    %255 = vector.load %arg5[%c0_91, %c0_92] : memref<32x128xf32, #tpu.memory_space<vmem>>, vector<32x128xf32>
    %cst_93 = arith.constant dense<0.000000e+00> : vector<8x128xf32>
    %256 = tpu.matmul %254, %255, %cst_93 {dimension_numbers = #tpu.dot_dimension_numbers<[1], [0], [0], [1], [0, 0, 1, 1], [], []>} : vector<8x32xf32>, vector<32x128xf32>, vector<8x128xf32> -> vector<8x128xf32>
    %c0_94 = arith.constant 0 : index
    %c0_95 = arith.constant 0 : index
    %257 = vector.load %arg6[%c0_94, %c0_95] : memref<1x128xf32, #tpu.memory_space<vmem>>, vector<1x128xf32>
    %258 = vector.broadcast %257 : vector<1x128xf32> to vector<8x128xf32>
    %259 = arith.addf %256, %258 : vector<8x128xf32>
    %c0_96 = arith.constant 0 : index
    %c0_97 = arith.constant 0 : index
    %260 = vector.load %arg7[%c0_96, %c0_97] : memref<8x128xf32, #tpu.memory_space<vmem>>, vector<8x128xf32>
    tpu.vector_store %arg7[%c0_96, %c0_97], %259 {strides = array<i32>} : memref<8x128xf32, #tpu.memory_space<vmem>>, vector<8x128xf32>,
    return
  }
}

</mosaic_0001>

<bundles_post_ra>
// kernel: model_forward.1
= control target key start
LH: loop header
LB: loop body
LE: loop exit
PB: predicated region body
PF: predicated region fallthrough
CT: control target
= control target key end

     0   :  { %12 = vsyncpa [#allocation5], 0  ;;  %s1331_s0 = inlined_call_operand.vmem [shape: s32[16], index: 0, kind: input, shape index: {}]   ;;  %s1332_s1 = inlined_call_operand.hbm [shape: f32[16,32], index: 1, kind: input, shape index: {}]   ;;  %s1333_s2 = inlined_call_operand.hbm [shape: f32[32,128], index: 2, kind: input, shape index: {}]   ;;  %s1334_s3 = inlined_call_operand.hbm [shape: f32[32,128], index: 3, kind: input, shape index: {}]   ;;  %s1335_s4 = inlined_call_operand.vmem [shape: f32[1,128], index: 4, kind: input, shape index: {}]   ;;  %s1336_s5 = inlined_call_operand.hbm [shape: f32[32,128], index: 5, kind: input, shape index: {}]   ;;  %s1337_s6 = inlined_call_operand.vmem [shape: f32[1,128], index: 6, kind: input, shape index: {}]   ;;  %s1338_s7 = inlined_call_operand.vmem [shape: f32[8,128], index: 7, kind: output, shape index: {}]  }
   0x1   :  { %13 = vsyncpa [#allocation4], 0 }
   0x2   :  { %14 = vsyncpa [#allocation8], 0 }
   0x3   :  { %15 = vsyncpa [#allocation11], 0  ;;  %s42_s26 = sshll.u32 %s1333_s2, 4  ;;  %s1068_s27 = smov [#allocation7]   ;;  %s43_s26 = int_to_ptr.hbm [resolvable:$true] %s42_s26 }
   0x4   :  { %s44_s28 = sshll.u32 %s1068_s27, 4  ;;  %s21_s8 = sshll.u32 %s1331_s0, 4  ;;  %s45_s28 = int_to_ptr.vmem [resolvable:$true] %s44_s28  ;;  %s22_s8 = int_to_ptr.vmem [resolvable:$true] %s21_s8 }
   0x5   :  { %s1069_s9 = smov 128   ;;  %s1070_s10 = smov 8  }
   0x6   :  { %50 = dma.hbm_to_vmem [thread:$0]  %s43_s26, 512, %s45_s28, [#allocation8], %s1069_s9, %s1069_s9, %s1070_s10  }
   0x7   :  { %s1071_s11 = smov [#allocation3]   ;;  %s29_s14 = sshll.u32 %s1332_s1, 4  ;;  %s30_s14 = int_to_ptr.hbm [resolvable:$true] %s29_s14 }
   0x8   :  { %24 = dma.vmem_to_smem %s22_s8, 16, %s1071_s11, [#allocation5]  }
   0x9   :  { %s1072_s2 = smov [#allocation6]   ;;  %s55_s18 = sshll.u32 %s1334_s3, 4  ;;  %s56_s18 = int_to_ptr.hbm [resolvable:$true] %s55_s18 }
   0xa   :  { %s31_s15 = sshll.u32 %s1072_s2, 4  ;;  %s1073_s0 = smov [#allocation9]   ;;  %s32_s15 = int_to_ptr.vmem [resolvable:$true] %s31_s15 }
   0xb   :  { %37 = dma.hbm_to_vmem [thread:$0]  %s30_s14, 256, %s32_s15, [#allocation4], %s1069_s9, %s1069_s9, %s1070_s10  }
   0xc   :  { %s57_s19 = sshll.u32 %s1073_s0, 4  ;;  %s70_s22 = sshll.u32 %s1336_s5, 4  ;;  %s58_s19 = int_to_ptr.vmem [resolvable:$true] %s57_s19  ;;  %s71_s22 = int_to_ptr.hbm [resolvable:$true] %s70_s22 }
   0xd   :  { %63 = dma.hbm_to_vmem [thread:$0]  %s56_s18, 512, %s58_s19, [#allocation8], %s1069_s9, %s1069_s9, %s1070_s10  }
   0xe   :  { %s1074_s1 = smov [#allocation10]  }
   0xf   :  { %s72_s23 = sshll.u32 %s1074_s1, 4  ;;  %s73_s23 = int_to_ptr.vmem [resolvable:$true] %s72_s23 }
  0x10   :  { %78 = dma.hbm_to_vmem [thread:$0]  %s71_s22, 512, %s73_s23, [#allocation11], %s1069_s9, %s1069_s9, %s1070_s10  }
  0x11   :  { %1060 = dma.done.wait [#allocation5], 16  }
  0x12   :  { %1061 = vsyncadd [#allocation5], 4294967280 }
  0x13   :  { %1062 = dma.done.wait [#allocation4], 256  }
  0x14   :  { %1063 = vsyncadd [#allocation4], 4294967040 }
  0x15   :  { %1064 = dma.done.wait [#allocation8], 1024  }
  0x16   :  { %1065 = vsyncadd [#allocation8], 4294966272 }
  0x17   :  { %1066 = dma.done.wait [#allocation11], 512  }
  0x18   :  { %1067 = vsyncadd [#allocation11], 4294966784 }
  0x19   :  { %101 = sfence }
  0x1a   :  { %v251_v0 = vld [vmem:[#allocation7 + $0x18] sm:$0xff]  ;;  %v250_v1 = vld [vmem:[#allocation7 + $0x10] sm:$0xff]  ;;  %vm102_vm0 = vcmask 261120   ;;  %v1075_v2 = vmov 0.0   ;;  %s1136_s3 = sld [smem:[#allocation3 + $0x5]]  ;;  %v249_v4 = vld [vmem:[#allocation7 + $0x8] sm:$0xff]  ;;  %v321_v16 = vlaneseq }
  0x1b   :  { %899 = vmatpush.msra.mxu1 %v251_v0  ;;  %292 = vmatpush.msra.mxu0 %v251_v0  ;;  %108 = vst.msk [vmem:[#allocation2 + $0x28] sm:$0xff] %vm102_vm0, %v1075_v2  ;;  %v1138_v3 = vld [vmem:[#allocation9 + $0x18] sm:$0xff]  ;;  %s1140_s5 = sld [smem:[#allocation3 + $0xd]]  ;;  %v1147_v5 = vld [vmem:[#allocation9 + $0x10] sm:$0xff]  ;;  %v248_v6 = vld [vmem:[#allocation7] sm:$0xff]  ;;  %vm118_vm1 = vcmask 253952  }
  0x1c   :  { %103 = vst.msk [vmem:[#allocation2] sm:$0xff] %vm102_vm0, %v1075_v2  ;;  %900 = vmatpush.msra.mxu2 %v251_v0  ;;  %439 = vmatpush.msra.mxu3 %v1138_v3  ;;  %v1154_v7 = vld [vmem:[#allocation9 + $0x8] sm:$0xff]  ;;  %s1156_s24 = sld [smem:[#allocation3]]  ;;  %v1172_v8 = vld [vmem:[#allocation9] sm:$0xff]  ;;  %v1218_v17 = vld [vmem:[%s1335_s4] ss:$0 sm:$0xff] }
  0x1d   :  { %901 = vmatpush.msra.mxu1 %v250_v1  ;;  %104 = vst.msk [vmem:[#allocation2 + $0x8] sm:$0xff] %vm102_vm0, %v1075_v2  ;;  %293 = vmatpush.msra.mxu0 %v250_v1  ;;  %s1160_s25 = sld [smem:[#allocation3 + $0x8]]  ;;  %v322_v18 = vand.u32 127, %v321_v16  ;;  %v1076_v23 = vmov 0.5   ;;  %s1077_s4 = smov 64  }
  0x1e   :  { %105 = vst.msk [vmem:[#allocation2 + $0x10] sm:$0xff] %vm102_vm0, %v1075_v2  ;;  %902 = vmatpush.msra.mxu2 %v250_v1  ;;  %440 = vmatpush.msra.mxu3 %v1147_v5  ;;  %s1078_s11 = smov 32   ;;  %s827_s12 = sld [smem:[#allocation3 + $0x6]] }
  0x1f   :  { %903 = vmatpush.msra.mxu1 %v249_v4  ;;  %106 = vst.msk [vmem:[#allocation2 + $0x18] sm:$0xff] %vm102_vm0, %v1075_v2  ;;  %294 = vmatpush.msra.mxu0 %v249_v4  ;;  %vm323_vm2 = vcmp.ge.s32.totalorder %v322_v18, 64  ;;  %vm324_vm3 = vcmp.lt.s32.totalorder %v322_v18, 96  ;;  %s833_s13 = sld [smem:[#allocation3 + $0xe]] }
  0x20   :  { %107 = vst.msk [vmem:[#allocation2 + $0x20] sm:$0xff] %vm102_vm0, %v1075_v2  ;;  %904 = vmatpush.msra.mxu2 %v249_v4  ;;  %441 = vmatpush.msra.mxu3 %v1154_v7  ;;  %p193_p0 = scmp.gt.s32.totalorder %s1136_s3, 0  ;;  %p816_p1 = scmp.lt.s32.totalorder %s1136_s3, 15  ;;  %vm325_vm4 = vmand %vm323_vm2, %vm324_vm3 }
  0x21   :  { %905 = vmatpush.msra.mxu1 %v248_v6  ;;  %109 = vst.msk [vmem:[#allocation2 + $0x30] sm:$0xff] %vm102_vm0, %v1075_v2  ;;  %295 = vmatpush.msra.mxu0 %v248_v6  ;;  %p201_p2 = scmp.gt.s32.totalorder %s1140_s5, 0  ;;  %p822_p3 = scmp.lt.s32.totalorder %s1140_s5, 15  ;;  %v1221_v24 = vsel %vm325_vm4, 1.0, %v1076_v23  ;;  %v1223_v26 = vsel %vm325_vm4, 0.0, %v1076_v23 }
  0x22   :  { %110 = vst.msk [vmem:[#allocation2 + $0x38] sm:$0xff] %vm102_vm0, %v1075_v2  ;;  %906 = vmatpush.msra.mxu2 %v248_v6  ;;  %s194_s26 = scalar_select %p193_p0, %s1136_s3, 0  ;;  %442 = vmatpush.msra.mxu3 %v1172_v8 }
  0x23   :  { %347 = vmatpush.msrb.mxu1 %v1138_v3  ;;  %s202_s27 = scalar_select %p201_p2, %s1140_s5, 0 }
  0x24   :  { %393 = vmatpush.msrb.mxu2 %v1138_v3  ;;  %577 = vmatpush.msrb.mxu3 %v1138_v3  ;;  %s1340_s26 = smov (!%p816_p1, %s194_s26), 15  ;;  %p112_p4 = scmp.gt.s32.totalorder %s1156_s24, 0 }
  0x25   :  { %348 = vmatpush.msrb.mxu1 %v1147_v5  ;;  %s1342_s27 = smov (!%p822_p3, %s202_s27), 15  ;;  %s197_s28 = scalar_lea.vmem [#allocation6], %s1340_s26 }
  0x26   :  { %394 = vmatpush.msrb.mxu2 %v1147_v5  ;;  %578 = vmatpush.msrb.mxu3 %v1147_v5  ;;  %v198_v9 = vld [vmem:[%s197_s28] sm:$0x1]  ;;  %p756_p5 = scmp.lt.s32.totalorder %s1156_s24, 15  ;;  %s205_s29 = scalar_lea.vmem [#allocation6], %s1342_s27 }
  0x27   :  { %349 = vmatpush.msrb.mxu1 %v1154_v7  ;;  %199 = vst.msk [vmem:[#allocation2 + $0x28] sm:$0x1] %vm118_vm1, %v198_v9  ;;  %v206_v10 = vld [vmem:[%s205_s29] sm:$0x1]  ;;  %s1344_s24 = smov (!%p112_p4, %s1156_s24), 0  ;;  %p121_p6 = scmp.gt.s32.totalorder %s1160_s25, 0 }
  0x28   :  { %395 = vmatpush.msrb.mxu2 %v1154_v7  ;;  %579 = vmatpush.msrb.mxu3 %v1154_v7  ;;  %207 = vst.msk [vmem:[#allocation2 + $0x29] sm:$0x1] %vm118_vm1, %v206_v10  ;;  %p762_p7 = scmp.lt.s32.totalorder %s1160_s25, 15  ;;  %s1346_s24 = smov (!%p756_p5, %s1344_s24), 15 }
  0x29   :  { %350 = vmatpush.msrb.mxu1 %v1172_v8  ;;  %s1348_s25 = smov (!%p121_p6, %s1160_s25), 0  ;;  %s116_s30 = scalar_lea.vmem [#allocation6], %s1346_s24 }
  0x2a   :  { %396 = vmatpush.msrb.mxu2 %v1172_v8  ;;  %580 = vmatpush.msrb.mxu3 %v1172_v8  ;;  %v117_v11 = vld [vmem:[%s116_s30] sm:$0x1]  ;;  %s1350_s25 = smov (!%p762_p7, %s1348_s25), 15  ;;  %s839_s14 = sld [smem:[#allocation3 + $0x7]] }
  0x2b   :  { %119 = vst.msk [vmem:[#allocation2] sm:$0x1] %vm118_vm1, %v117_v11  ;;  %s125_s8 = scalar_lea.vmem [#allocation6], %s1350_s25  ;;  %s845_s2 = sld [smem:[#allocation3 + $0xf]] }
  0x2c   :  { %v126_v13 = vld [vmem:[%s125_s8] sm:$0x1]  ;;  %p209_p8 = scmp.gt.s32.totalorder %s827_s12, 0  ;;  %p217_p9 = scmp.gt.s32.totalorder %s833_s13, 0 }
  0x2d   :  { %127 = vst.msk [vmem:[#allocation2 + $0x1] sm:$0x1] %vm118_vm1, %v126_v13  ;;  %p828_p10 = scmp.lt.s32.totalorder %s827_s12, 15  ;;  %p834_p12 = scmp.lt.s32.totalorder %s833_s13, 15 }
  0x2e   :  { %s1352_s12 = smov (!%p209_p8, %s827_s12), 0  ;;  %s1354_s13 = smov (!%p217_p9, %s833_s13), 0 }
  0x2f   :  { %v245_v12 = vld [vmem:[#allocation2 + $0x28] sm:$0xff]  ;;  %s1358_s12 = smov (!%p828_p10, %s1352_s12), 15  ;;  %s1360_s13 = smov (!%p834_p12, %s1354_s13), 15 }
  0x30   :  { %856 = vmatmul.msk.f32.vlgmr.msra.gmra.mxu1 %vm102_vm0, %v245_v12  ;;  %p225_p11 = scmp.gt.s32.totalorder %s839_s14, 0  ;;  %p840_p0 = scmp.lt.s32.totalorder %s839_s14, 15 }
  0x31   :  { %485 = vmatpush.msra.mxu1 %v1138_v3  ;;  %p233_p13 = scmp.gt.s32.totalorder %s845_s2, 0  ;;  %p846_p1 = scmp.lt.s32.totalorder %s845_s2, 15 }
  0x32   :  { %s226_s15 = scalar_select %p225_p11, %s839_s14, 0 }
  0x33   :  { %486 = vmatpush.msra.mxu1 %v1147_v5  ;;  %s1356_s2 = smov (!%p233_p13, %s845_s2), 0  ;;  %s213_s16 = scalar_lea.vmem [#allocation6], %s1358_s12 }
  0x34   :  { %v240_v14 = vld [vmem:[#allocation2] sm:$0xff]  ;;  %s1362_s15 = smov (!%p840_p0, %s226_s15), 15  ;;  %s1364_s2 = smov (!%p846_p1, %s1356_s2), 15 }
  0x35   :  { %487 = vmatpush.msra.mxu1 %v1154_v7  ;;  %851 = vmatmul.msk.f32.vlgmr.msra.gmra.mxu0 %vm102_vm0, %v240_v14  ;;  %v214_v35 = vld [vmem:[%s213_s16] sm:$0x1]  ;;  %s221_s17 = scalar_lea.vmem [#allocation6], %s1360_s13  ;;  %s229_s18 = scalar_lea.vmem [#allocation6], %s1362_s15 }
  0x36   :  { %v222_v36 = vld [vmem:[%s221_s17] sm:$0x1]  ;;  %215 = vst.msk [vmem:[#allocation2 + $0x30] sm:$0x1] %vm118_vm1, %v214_v35  ;;  %s237_s0 = scalar_lea.vmem [#allocation6], %s1364_s2  ;;  %s767_s19 = sld [smem:[#allocation3 + $0x1]] }
  0x37   :  { %488 = vmatpush.msra.mxu1 %v1172_v8  ;;  %v230_v37 = vld [vmem:[%s229_s18] sm:$0x1]  ;;  %223 = vst.msk [vmem:[#allocation2 + $0x31] sm:$0x1] %vm118_vm1, %v222_v36  ;;  %s773_s20 = sld [smem:[#allocation3 + $0x9]] }
  0x38   :  { %351 = vmatmul.f32.vlgmr.msrb.gmra.mxu1 %v1075_v2  ;;  %v238_v38 = vld [vmem:[%s237_s0] sm:$0x1]  ;;  %231 = vst.msk [vmem:[#allocation2 + $0x38] sm:$0x1] %vm118_vm1, %v230_v37  ;;  %s779_s23 = sld [smem:[#allocation3 + $0x2]] }
  0x39   :  { %623 = vmatpush.msrb.mxu1 %v1138_v3  ;;  %239 = vst.msk [vmem:[#allocation2 + $0x39] sm:$0x1] %vm118_vm1, %v238_v38  ;;  %s785_s3 = sld [smem:[#allocation3 + $0xa]] }
  0x3a   :  { %s791_s26 = sld [smem:[#allocation3 + $0x3]] }
  0x3b   :  { %624 = vmatpush.msrb.mxu1 %v1147_v5  ;;  %s797_s27 = sld [smem:[#allocation3 + $0xb]] }
  0x3c   :  { %p129_p2 = scmp.gt.s32.totalorder %s767_s19, 0  ;;  %p768_p4 = scmp.lt.s32.totalorder %s767_s19, 15 }
  0x3d   :  { %625 = vmatpush.msrb.mxu1 %v1154_v7  ;;  %p137_p3 = scmp.gt.s32.totalorder %s773_s20, 0  ;;  %p774_p5 = scmp.lt.s32.totalorder %s773_s20, 15 }
  0x3e   :  { %v246_v39 = vld [vmem:[#allocation2 + $0x30] sm:$0xff]  ;;  %s130_s21 = scalar_select %p129_p2, %s767_s19, 0 }
  0x3f   :  { %626 = vmatpush.msrb.mxu1 %v1172_v8  ;;  %857 = vmatmul.msk.f32.vlgmr.msra.gmra.mxu2 %vm102_vm0, %v246_v39  ;;  %s1366_s20 = smov (!%p137_p3, %s773_s20), 0  ;;  %p145_p6 = scmp.gt.s32.totalorder %s779_s23, 0 }
  0x40   :  { %531 = vmatpush.msra.mxu2 %v1138_v3  ;;  %v247_v40 = vld [vmem:[#allocation2 + $0x38] sm:$0xff]  ;;  %s1368_s21 = smov (!%p768_p4, %s130_s21), 15  ;;  %s1370_s20 = smov (!%p774_p5, %s1366_s20), 15 }
  0x41   :  { %s133_s22 = scalar_lea.vmem [#allocation6], %s1368_s21  ;;  %s141_s1 = scalar_lea.vmem [#allocation6], %s1370_s20 }
  0x42   :  { %532 = vmatpush.msra.mxu2 %v1147_v5  ;;  %v134_v43 = vld [vmem:[%s133_s22] sm:$0x1]  ;;  %p153_p7 = scmp.gt.s32.totalorder %s785_s3, 0  ;;  %p780_p8 = scmp.lt.s32.totalorder %s779_s23, 15 }
  0x43   :  { %v142_v44 = vld [vmem:[%s141_s1] sm:$0x1]  ;;  %135 = vst.msk [vmem:[#allocation2 + $0x8] sm:$0x1] %vm118_vm1, %v134_v43  ;;  %s146_s5 = scalar_select %p145_p6, %s779_s23, 0 }
  0x44   :  { %533 = vmatpush.msra.mxu2 %v1154_v7  ;;  %143 = vst.msk [vmem:[#allocation2 + $0x9] sm:$0x1] %vm118_vm1, %v142_v44  ;;  %p786_p9 = scmp.lt.s32.totalorder %s785_s3, 15  ;;  %s1372_s3 = smov (!%p153_p7, %s785_s3), 0 }
  0x45   :  { %s1374_s5 = smov (!%p780_p8, %s146_s5), 15  ;;  %p161_p10 = scmp.gt.s32.totalorder %s791_s26, 0 }
  0x46   :  { %534 = vmatpush.msra.mxu2 %v1172_v8  ;;  %s1376_s3 = smov (!%p786_p9, %s1372_s3), 15  ;;  %s149_s24 = scalar_lea.vmem [#allocation6], %s1374_s5 }
  0x47   :  { %858 = vmatmul.msk.f32.gmra.mxu2 %vm102_vm0, %v247_v40  ;;  %v150_v0 = vld [vmem:[%s149_s24] sm:$0x1]  ;;  %s157_s25 = scalar_lea.vmem [#allocation6], %s1376_s3  ;;  %p169_p11 = scmp.gt.s32.totalorder %s797_s27, 0 }
  0x48   :  { %v158_v1 = vld [vmem:[%s157_s25] sm:$0x1]  ;;  %151 = vst.msk [vmem:[#allocation2 + $0x10] sm:$0x1] %vm118_vm1, %v150_v0  ;;  %p792_p12 = scmp.lt.s32.totalorder %s791_s26, 15  ;;  %p798_p13 = scmp.lt.s32.totalorder %s797_s27, 15 }
  0x49   :  { %159 = vst.msk [vmem:[#allocation2 + $0x11] sm:$0x1] %vm118_vm1, %v158_v1  ;;  %s1378_s26 = smov (!%p161_p10, %s791_s26), 0  ;;  %s1380_s27 = smov (!%p169_p11, %s797_s27), 0 }
  0x4a   :  { %s1382_s26 = smov (!%p792_p12, %s1378_s26), 15  ;;  %s1384_s27 = smov (!%p798_p13, %s1380_s27), 15 }
  0x4b   :  { %v241_v45 = vld [vmem:[#allocation2 + $0x8] sm:$0xff]  ;;  %s165_s28 = scalar_lea.vmem [#allocation6], %s1382_s26  ;;  %s173_s29 = scalar_lea.vmem [#allocation6], %s1384_s27 }
  0x4c   :  { %852 = vmatmul.msk.f32.gmra.mxu0 %vm102_vm0, %v241_v45  ;;  %s803_s30 = sld [smem:[#allocation3 + $0x4]] }
  0x4d   :  { %s809_s8 = sld [smem:[#allocation3 + $0xc]] }
  0x50   :  { %v242_v2 = vld [vmem:[#allocation2 + $0x10] sm:$0xff] }
  0x52   :  { %p177_p0 = scmp.gt.s32.totalorder %s803_s30, 0  ;;  %p804_p2 = scmp.lt.s32.totalorder %s803_s30, 15 }
  0x53   :  { %p185_p1 = scmp.gt.s32.totalorder %s809_s8, 0  ;;  %p810_p3 = scmp.lt.s32.totalorder %s809_s8, 15 }
  0x54   :  { %853 = vmatmul.msk.f32.gmra.mxu0 %vm102_vm0, %v242_v2  ;;  %s178_s9 = scalar_select %p177_p0, %s803_s30, 0 }
  0x55   :  { %s1386_s8 = smov (!%p185_p1, %s809_s8), 0 }
  0x56   :  { %s1388_s9 = smov (!%p804_p2, %s178_s9), 15  ;;  %s1390_s8 = smov (!%p810_p3, %s1386_s8), 15 }
  0x57   :  { %s181_s10 = scalar_lea.vmem [#allocation6], %s1388_s9  ;;  %s189_s12 = scalar_lea.vmem [#allocation6], %s1390_s8 }
  0x58   :  { %v190_v43 = vld [vmem:[%s189_s12] sm:$0x1] }
  0x59   :  { %191 = vst.msk [vmem:[#allocation2 + $0x21] sm:$0x1] %vm118_vm1, %v190_v43 }
  0xad   :  { %v1213_v15 = vpop.f32.mrf.mxu1 }
  0xae   :  { %v313_v0 = vadd.f32 %v1218_v17, %v1213_v15 }
  0xb2   :  { %v297_v19 = vpop.f32.mrf.mxu0 }
  0xb3   :  { %v298_v21 = vadd.f32 %v1218_v17, %v297_v19  ;;  %v166_v19 = vld [vmem:[%s165_s28] sm:$0x1] }
  0xb4   :  { %167 = vst.msk [vmem:[#allocation2 + $0x18] sm:$0x1] %vm118_vm1, %v166_v19 }
  0xb5   :  { %v352_v20 = vpop.f32.mrf.mxu1 }
  0xb6   :  { %v355_v22 = vadd.f32 %v352_v20, %v298_v21  ;;  %v174_v20 = vld [vmem:[%s173_s29] sm:$0x1] }
  0xb7   :  { %175 = vst.msk [vmem:[#allocation2 + $0x19] sm:$0x1] %vm118_vm1, %v174_v20 }
  0xb8   :  { %920 = vtanh.f32 %v355_v22 }
  0xbe   :  { %v921_v25 = vpop.eup %920  ;;  %v243_v21 = vld [vmem:[#allocation2 + $0x18] sm:$0xff] }
  0xbf   :  { %v357_v27 = vmul.f32 %v921_v25, %v1221_v24  ;;  %854 = vmatmul.msk.f32.gmra.mxu0 %vm102_vm0, %v243_v21 }
  0xc1   :  { %v358_v28 = vadd.f32 %v357_v27, %v1223_v26 }
  0xc2   :  { %v1252_v47 = vpop.f32.mrf.mxu2 }
  0xc3   :  { %361 = vrot.lane.b32.xlu0 %v358_v28, %s1077_s4  ;;  %v359_v31 = vmul.f32 0.0, %v358_v28 }
  0xc9   :  { %v300_v49 = vpop.f32.mrf.mxu0 }
  0xca   :  { %v1254_v48 = vpop.f32.mrf.mxu2  ;;  %v301_v50 = vadd.f32 %v1218_v17, %v300_v49 }
  0xd1   :  { %v303_v4 = vpop.f32.mrf.mxu0 }
 0x135   :  { %v362_v29 = vpop.permute.xlu0 %361 }
 0x136   :  { %v364_v30 = vmul.f32 %v362_v29, %v358_v28 }
 0x138   :  { %366 = vrot.lane.b32.xlu0 %v364_v30, %s1078_s11 }
 0x13c   :  { %v306_v27 = vpop.f32.mrf.mxu0 }
 0x1aa   :  { %v367_v32 = vpop.permute.xlu0 %366 }
 0x1ab   :  { %v1229_v33 = vadd.f32 %v367_v32, %v359_v31 }
 0x1ad   :  { %922 = vtanh.f32 %v1229_v33 }
 0x1b3   :  { %v923_v34 = vpop.eup %922 }
 0x1b4   :  { %372 = vrot.lane.b32.xlu1 %v923_v34, %s1077_s4 }
 0x226   :  { %v373_v41 = vpop.permute.xlu1 %372 }
 0x227   :  { %v375_v42 = vmul.f32 %v373_v41, %v358_v28  ;;  %v307_v28 = vadd.f32 %v1218_v17, %v306_v27 }
 0x229   :  { %377 = vrot.lane.b32.xlu1 %v375_v42, %s1078_s11  ;;  %v182_v42 = vld [vmem:[%s181_s10] sm:$0x1] }
 0x22a   :  { %183 = vst.msk [vmem:[#allocation2 + $0x20] sm:$0x1] %vm118_vm1, %v182_v42 }
 0x231   :  { %v244_v44 = vld [vmem:[#allocation2 + $0x20] sm:$0xff] }
 0x232   :  { %855 = vmatmul.msk.f32.gmra.mxu0 %vm102_vm0, %v244_v44  ;;  %v699_v44 = vld [vmem:[#allocation10 + $0x8] sm:$0xff] }
 0x29b   :  { %v378_v46 = vpop.permute.xlu1 %377 }
 0x29c   :  { %859 = vmatmul.msk.f32.vlgmr.msrb.gmra.mxu2 %vm102_vm0, %v378_v46 }
 0x29d   :  { %669 = vmatpush.msrb.mxu2 %v1138_v3 }
 0x29f   :  { %670 = vmatpush.msrb.mxu2 %v1147_v5  ;;  %v304_v5 = vadd.f32 %v1218_v17, %v303_v4 }
 0x2a1   :  { %671 = vmatpush.msrb.mxu2 %v1154_v7 }
 0x2a3   :  { %672 = vmatpush.msrb.mxu2 %v1172_v8 }
 0x2af   :  { %v309_v46 = vpop.f32.mrf.mxu0 }
 0x2b0   :  { %v310_v49 = vadd.f32 %v1218_v17, %v309_v46 }
 0x31f   :  { %v398_v51 = vpop.f32.mrf.mxu2 }
 0x320   :  { %v401_v52 = vadd.f32 %v398_v51, %v301_v50 }
 0x322   :  { %924 = vtanh.f32 %v401_v52 }
 0x328   :  { %v925_v53 = vpop.eup %924 }
 0x329   :  { %v403_v54 = vmul.f32 %v925_v53, %v1221_v24 }
 0x32b   :  { %v404_v55 = vadd.f32 %v403_v54, %v1223_v26 }
 0x32d   :  { %407 = vrot.lane.b32.xlu2 %v404_v55, %s1077_s4  ;;  %v405_v58 = vmul.f32 %v404_v55, %v1229_v33 }
 0x387   :  { %v408_v56 = vpop.permute.xlu2 %407 }
 0x388   :  { %v410_v57 = vmul.f32 %v408_v56, %v404_v55 }
 0x38a   :  { %412 = vrot.lane.b32.xlu2 %v410_v57, %s1078_s11 }
 0x3e4   :  { %v413_v59 = vpop.permute.xlu2 %412 }
 0x3e5   :  { %v415_v60 = vadd.f32 %v413_v59, %v405_v58 }
 0x3e7   :  { %926 = vtanh.f32 %v415_v60 }
 0x3ed   :  { %v927_v61 = vpop.eup %926 }
 0x3ee   :  { %418 = vrot.lane.b32.xlu0 %v927_v61, %s1077_s4 }
 0x460   :  { %v419_v62 = vpop.permute.xlu0 %418 }
 0x461   :  { %v421_v63 = vmul.f32 %v419_v62, %v404_v55 }
 0x463   :  { %423 = vrot.lane.b32.xlu1 %v421_v63, %s1078_s11 }
 0x4d5   :  { %v424_v3 = vpop.permute.xlu1 %423 }
 0x4d6   :  { %860 = vmatmul.msk.f32.vlgmr.msra.gmra.mxu3 %vm102_vm0, %v424_v3 }
 0x559   :  { %v444_v6 = vpop.f32.mrf.mxu3 }
 0x55a   :  { %v447_v7 = vadd.f32 %v444_v6, %v304_v5 }
 0x55c   :  { %928 = vtanh.f32 %v447_v7 }
 0x562   :  { %v929_v8 = vpop.eup %928 }
 0x563   :  { %v449_v9 = vmul.f32 %v929_v8, %v1221_v24 }
 0x565   :  { %v450_v10 = vadd.f32 %v449_v9, %v1223_v26 }
 0x567   :  { %453 = vrot.lane.b32.xlu2 %v450_v10, %s1077_s4  ;;  %v451_v13 = vmul.f32 %v450_v10, %v415_v60 }
 0x5c1   :  { %v454_v11 = vpop.permute.xlu2 %453 }
 0x5c2   :  { %v456_v12 = vmul.f32 %v454_v11, %v450_v10 }
 0x5c4   :  { %458 = vrot.lane.b32.xlu0 %v456_v12, %s1078_s11 }
 0x636   :  { %v459_v14 = vpop.permute.xlu0 %458 }
 0x637   :  { %v461_v16 = vadd.f32 %v459_v14, %v451_v13  ;;  %v316_v14 = vadd.f32 %v1218_v17, %v1252_v47 }
 0x639   :  { %930 = vtanh.f32 %v461_v16 }
 0x63f   :  { %v931_v18 = vpop.eup %930 }
 0x640   :  { %464 = vrot.lane.b32.xlu1 %v931_v18, %s1077_s4 }
 0x6b2   :  { %v465_v22 = vpop.permute.xlu1 %464 }
 0x6b3   :  { %v467_v23 = vmul.f32 %v465_v22, %v450_v10 }
 0x6b5   :  { %469 = vrot.lane.b32.xlu2 %v467_v23, %s1078_s11 }
 0x70f   :  { %v470_v25 = vpop.permute.xlu2 %469 }
 0x710   :  { %861 = vmatmul.msk.f32.vlgmr.msra.gmra.mxu1 %vm102_vm0, %v470_v25 }
 0x78d   :  { %v490_v29 = vpop.f32.mrf.mxu1 }
 0x78e   :  { %v493_v30 = vadd.f32 %v490_v29, %v307_v28 }
 0x790   :  { %932 = vtanh.f32 %v493_v30 }
 0x796   :  { %v933_v31 = vpop.eup %932 }
 0x797   :  { %v495_v32 = vmul.f32 %v933_v31, %v1221_v24 }
 0x799   :  { %v496_v33 = vadd.f32 %v495_v32, %v1223_v26  ;;  %v319_v32 = vadd.f32 %v1218_v17, %v1254_v48  ;;  %v701_v17 = vld [vmem:[#allocation10 + $0x18] sm:$0xff]  ;;  %v700_v48 = vld [vmem:[#allocation10 + $0x10] sm:$0xff] }
 0x79a   :  { %723 = vmatpush.msra.mxu3 %v701_v17 }
 0x79b   :  { %499 = vrot.lane.b32.xlu0 %v496_v33, %s1077_s4  ;;  %v497_v36 = vmul.f32 %v496_v33, %v461_v16 }
 0x79c   :  { %724 = vmatpush.msra.mxu3 %v700_v48 }
 0x79e   :  { %725 = vmatpush.msra.mxu3 %v699_v44 }
 0x80d   :  { %v500_v34 = vpop.permute.xlu0 %499 }
 0x80e   :  { %v502_v35 = vmul.f32 %v500_v34, %v496_v33 }
 0x810   :  { %504 = vrot.lane.b32.xlu1 %v502_v35, %s1078_s11 }
 0x882   :  { %v505_v37 = vpop.permute.xlu1 %504 }
 0x883   :  { %v507_v38 = vadd.f32 %v505_v37, %v497_v36 }
 0x885   :  { %934 = vtanh.f32 %v507_v38 }
 0x88b   :  { %v935_v39 = vpop.eup %934 }
 0x88c   :  { %510 = vrot.lane.b32.xlu2 %v935_v39, %s1077_s4 }
 0x8e6   :  { %v511_v40 = vpop.permute.xlu2 %510 }
 0x8e7   :  { %v513_v41 = vmul.f32 %v511_v40, %v496_v33 }
 0x8e9   :  { %515 = vrot.lane.b32.xlu0 %v513_v41, %s1078_s11 }
 0x95b   :  { %v516_v45 = vpop.permute.xlu0 %515 }
 0x95c   :  { %862 = vmatmul.msk.f32.vlgmr.msra.gmra.mxu2 %vm102_vm0, %v516_v45 }
 0x9df   :  { %v536_v50 = vpop.f32.mrf.mxu2 }
 0x9e0   :  { %v539_v51 = vadd.f32 %v536_v50, %v310_v49  ;;  %v919_v49 = vld [vmem:[%s1337_s6] ss:$0 sm:$0xff] }
 0x9e2   :  { %936 = vtanh.f32 %v539_v51 }
 0x9e8   :  { %v937_v52 = vpop.eup %936 }
 0x9e9   :  { %v541_v53 = vmul.f32 %v937_v52, %v1221_v24 }
 0x9eb   :  { %v542_v54 = vadd.f32 %v541_v53, %v1223_v26 }
 0x9ed   :  { %545 = vrot.lane.b32.xlu1 %v542_v54, %s1077_s4  ;;  %v543_v57 = vmul.f32 %v542_v54, %v507_v38 }
 0xa5f   :  { %v546_v55 = vpop.permute.xlu1 %545 }
 0xa60   :  { %v548_v56 = vmul.f32 %v546_v55, %v542_v54 }
 0xa62   :  { %550 = vrot.lane.b32.xlu2 %v548_v56, %s1078_s11 }
 0xabc   :  { %v551_v58 = vpop.permute.xlu2 %550 }
 0xabd   :  { %v553_v59 = vadd.f32 %v551_v58, %v543_v57 }
 0xabf   :  { %938 = vtanh.f32 %v553_v59 }
 0xac5   :  { %v939_v60 = vpop.eup %938 }
 0xac6   :  { %556 = vrot.lane.b32.xlu0 %v939_v60, %s1077_s4 }
 0xb38   :  { %v557_v61 = vpop.permute.xlu0 %556 }
 0xb39   :  { %v559_v62 = vmul.f32 %v557_v61, %v542_v54 }
 0xb3b   :  { %561 = vrot.lane.b32.xlu1 %v559_v62, %s1078_s11 }
 0xbad   :  { %v562_v63 = vpop.permute.xlu1 %561 }
 0xbae   :  { %863 = vmatmul.msk.f32.vlgmr.msrb.gmra.mxu3 %vm102_vm0, %v562_v63 }
 0xc31   :  { %v582_v1 = vpop.f32.mrf.mxu3 }
 0xc32   :  { %v585_v2 = vadd.f32 %v582_v1, %v313_v0 }
 0xc34   :  { %940 = vtanh.f32 %v585_v2 }
 0xc3a   :  { %v941_v3 = vpop.eup %940 }
 0xc3b   :  { %v587_v4 = vmul.f32 %v941_v3, %v1221_v24 }
 0xc3d   :  { %v588_v5 = vadd.f32 %v587_v4, %v1223_v26 }
 0xc3f   :  { %591 = vrot.lane.b32.xlu2 %v588_v5, %s1077_s4  ;;  %v589_v8 = vmul.f32 %v588_v5, %v553_v59 }
 0xc99   :  { %v592_v6 = vpop.permute.xlu2 %591 }
 0xc9a   :  { %v594_v7 = vmul.f32 %v592_v6, %v588_v5 }
 0xc9c   :  { %596 = vrot.lane.b32.xlu0 %v594_v7, %s1078_s11 }
 0xd0e   :  { %v597_v9 = vpop.permute.xlu0 %596 }
 0xd0f   :  { %v599_v10 = vadd.f32 %v597_v9, %v589_v8 }
 0xd11   :  { %942 = vtanh.f32 %v599_v10 }
 0xd17   :  { %v943_v11 = vpop.eup %942 }
 0xd18   :  { %602 = vrot.lane.b32.xlu1 %v943_v11, %s1077_s4 }
 0xd8a   :  { %v603_v15 = vpop.permute.xlu1 %602 }
 0xd8b   :  { %v605_v12 = vmul.f32 %v603_v15, %v588_v5 }
 0xd8d   :  { %607 = vrot.lane.b32.xlu2 %v605_v12, %s1078_s11 }
 0xde7   :  { %v608_v13 = vpop.permute.xlu2 %607 }
 0xde8   :  { %864 = vmatmul.msk.f32.vlgmr.msrb.gmra.mxu1 %vm102_vm0, %v608_v13 }
 0xe65   :  { %v628_v16 = vpop.f32.mrf.mxu1 }
 0xe66   :  { %v631_v18 = vadd.f32 %v628_v16, %v316_v14 }
 0xe68   :  { %944 = vtanh.f32 %v631_v18 }
 0xe6e   :  { %v945_v19 = vpop.eup %944 }
 0xe6f   :  { %v633_v20 = vmul.f32 %v945_v19, %v1221_v24 }
 0xe71   :  { %v634_v21 = vadd.f32 %v633_v20, %v1223_v26 }
 0xe73   :  { %637 = vrot.lane.b32.xlu0 %v634_v21, %s1077_s4  ;;  %v635_v25 = vmul.f32 %v634_v21, %v599_v10 }
 0xee5   :  { %v638_v22 = vpop.permute.xlu0 %637 }
 0xee6   :  { %v640_v23 = vmul.f32 %v638_v22, %v634_v21 }
 0xee8   :  { %642 = vrot.lane.b32.xlu1 %v640_v23, %s1078_s11 }
 0xf5a   :  { %v643_v27 = vpop.permute.xlu1 %642 }
 0xf5b   :  { %v645_v28 = vadd.f32 %v643_v27, %v635_v25 }
 0xf5d   :  { %946 = vtanh.f32 %v645_v28 }
 0xf63   :  { %v947_v29 = vpop.eup %946 }
 0xf64   :  { %648 = vrot.lane.b32.xlu2 %v947_v29, %s1077_s4 }
 0xfbe   :  { %v649_v47 = vpop.permute.xlu2 %648 }
 0xfbf   :  { %v651_v30 = vmul.f32 %v649_v47, %v634_v21 }
 0xfc1   :  { %653 = vrot.lane.b32.xlu0 %v651_v30, %s1078_s11 }
0x1033   :  { %v654_v31 = vpop.permute.xlu0 %653 }
0x1034   :  { %865 = vmatmul.msk.f32.vlgmr.msrb.gmra.mxu2 %vm102_vm0, %v654_v31 }
0x10b7   :  { %v674_v33 = vpop.f32.mrf.mxu2 }
0x10b8   :  { %v677_v34 = vadd.f32 %v674_v33, %v319_v32 }
0x10ba   :  { %948 = vtanh.f32 %v677_v34 }
0x10c0   :  { %v949_v35 = vpop.eup %948 }
0x10c1   :  { %v679_v36 = vmul.f32 %v949_v35, %v1221_v24  ;;  %v698_v24 = vld [vmem:[#allocation10] sm:$0xff] }
0x10c2   :  { %726 = vmatpush.msra.mxu3 %v698_v24 }
0x10c3   :  { %v680_v37 = vadd.f32 %v679_v36, %v1223_v26 }
0x10c5   :  { %683 = vrot.lane.b32.xlu1 %v680_v37, %s1077_s4  ;;  %v681_v40 = vmul.f32 %v680_v37, %v645_v28 }
0x1137   :  { %v684_v38 = vpop.permute.xlu1 %683 }
0x1138   :  { %v686_v39 = vmul.f32 %v684_v38, %v680_v37 }
0x113a   :  { %688 = vrot.lane.b32.xlu2 %v686_v39, %s1078_s11 }
0x1194   :  { %v689_v41 = vpop.permute.xlu2 %688 }
0x1195   :  { %v691_v42 = vadd.f32 %v689_v41, %v681_v40 }
0x1197   :  { %950 = vtanh.f32 %v691_v42 }
0x119d   :  { %v951_v43 = vpop.eup %950 }
0x119e   :  { %694 = vrot.lane.b32.xlu0 %v951_v43, %s1077_s4 }
0x1210   :  { %v695_v26 = vpop.permute.xlu0 %694 }
0x1211   :  { %v697_v45 = vmul.f32 %v695_v26, %v680_v37 }
0x1213   :  { %707 = vrot.lane.b32.xlu1 %v697_v45, %s1078_s11 }
0x1285   :  { %v708_v46 = vpop.permute.xlu1 %707 }
0x1286   :  { %866 = vmatmul.msk.f32.vlgmr.msra.gmra.mxu3 %vm102_vm0, %v708_v46 }
0x1309   :  { %v728_v50 = vpop.f32.mrf.mxu3 }
0x130a   :  { %v729_v51 = vadd.f32 %v919_v49, %v728_v50 }
0x130c   :  { %731 = vst [vmem:[%s1338_s7] sm:$0xff] %v729_v51 }
0x130d   :  { %736 = vsyncpa [#allocation4], 1 }
0x130e   :  { %737 = vsyncpa [#allocation8], 1 }
0x130f   :  { %738 = vsyncpa [#allocation11], 1 }
0x1310   :  { %739 = vsyncpa [#allocation5], 1 }

</bundles_post_ra>
